<compile_context>
chip_gen: v6e
topology: v6e:2x2x1
jax: 0.10.0
libtpu: 0.0.40
codegen_flags: <defaults>
</compile_context>

<pallas_src>
import jax
import jax.numpy as jnp
from jax.experimental import pallas as pl
from jax.experimental.pallas import tpu as pltpu

_LANE = 128


def adapter_kernel(x_ref, w1_ref, b1_ref, w2_ref, b2_ref, o_ref):
    """One row-tile of the adapter forward pass.

    x_ref : (tm, E)  input tile (also the residual)
    w1_ref: (E, A)   fc1 weight (transposed vs. PyTorch layout)
    b1_ref: (1, A)   fc1 bias
    w2_ref: (A, E)   fc2 weight (transposed vs. PyTorch layout)
    b2_ref: (1, E)   fc2 bias
    o_ref : (tm, E)  output tile
    """
    x = x_ref[...]  # native dtype straight into the MXU
    # fc1 + bias + ReLU (f32 accumulation on the MXU)
    h = jnp.dot(x, w1_ref[...], preferred_element_type=jnp.float32)
    h = jnp.maximum(h + b1_ref[...], 0.0)
    # TODO(synk): nn.Dropout is identity in eval mode; training-mode dropout
    # would use pltpu.prng_seed + pltpu.stateful_bernoulli.
    # fc2 (+ bias): cast h back to the weight dtype so bf16 weights keep the
    # MXU in its native bf16 mode; accumulation stays f32.
    y = jnp.dot(h.astype(w2_ref.dtype), w2_ref[...],
                preferred_element_type=jnp.float32)
    y = y + b2_ref[...]
    # residual add in f32, then cast to the output dtype
    o_ref[...] = (y + x.astype(jnp.float32)).astype(o_ref.dtype)


def _round_up(n, m):
    return (n + m - 1) // m * m


def _tpu_vmem_budget_bytes():
    """~75% of this chip's per-core VMEM (64 MiB on v7x, 128 MiB on v5e/v6e),
    capped at 96 MiB so big-VMEM parts don't request absurd scoped limits."""
    try:
        cap = int(pltpu.get_tpu_info().vmem_capacity_bytes)
    except Exception:
        cap = 64 * 1024 * 1024  # conservative: smallest current part (v7x)
    return min(int(0.75 * cap), 96 * 1024 * 1024)


def _tpu_num_tensorcores():
    """Best-effort TC count (2 on v7x, 1 on v5e/v6e); default 1 if unknown."""
    try:
        info = pltpu.get_tpu_info()
        for attr in ("num_cores", "core_count", "num_tensorcores"):
            v = getattr(info, attr, None)
            if isinstance(v, int) and v > 0:
                return v
    except Exception:
        pass
    return 1


def _choose_tm(M, E, A, x_itemsize, w_itemsize, vmem_budget_bytes, num_cores):
    """Pick a row tile that keeps double-buffered DMA inside the VMEM budget."""
    sub = 16 if x_itemsize == 2 else 8          # sublane packing of the dtype
    # Constant VMEM cost: weights + biases (default 2-deep buffering each).
    const_bytes = 2 * (E * A + A * E + A + E) * w_itemsize
    # Per-row cost: x tile + out tile (each 2-deep buffered) + f32 temps (h, y).
    per_row = 4 * E * x_itemsize + 4 * (A + E)
    avail = max(vmem_budget_bytes - const_bytes, per_row * sub)
    cap = max(sub, (avail // per_row) // sub * sub)
    tm = min(1024, cap)                          # 1024 rows ~ mem-bound roofline
    if num_cores > 1:
        # keep >= num_cores grid steps so every TensorCore gets work (v7x)
        tm = min(tm, max(sub, _round_up(pl.cdiv(M, num_cores), sub)))
    if tm >= M:
        return M                                 # single full-extent tile
    return max(tm, sub)


def _adapter_pallas(x2, w1, b1_2d, w2, b2_2d, tm, vmem_limit_bytes):
    M, E = x2.shape
    A = w1.shape[1]
    grid = pl.cdiv(M, tm)                        # last tile may be partial

    x_bytes = x2.dtype.itemsize
    w_bytes = w1.dtype.itemsize
    cost = pl.CostEstimate(
        flops=4 * M * E * A,                     # two M*E*A matmuls
        transcendentals=0,
        bytes_accessed=2 * M * E * x_bytes + (E * A + A * E + A + E) * w_bytes,
    )

    return pl.pallas_call(
        adapter_kernel,
        out_shape=jax.ShapeDtypeStruct((M, E), x2.dtype),
        grid_spec=pltpu.PrefetchScalarGridSpec(
            num_scalar_prefetch=0,
            grid=(grid,),
            in_specs=[
                pl.BlockSpec((tm, E), lambda i: (i, 0)),   # x tile
                pl.BlockSpec((E, A), lambda i: (0, 0)),    # w1 (grid-invariant)
                pl.BlockSpec((1, A), lambda i: (0, 0)),    # b1
                pl.BlockSpec((A, E), lambda i: (0, 0)),    # w2
                pl.BlockSpec((1, E), lambda i: (0, 0)),    # b2
            ],
            out_specs=pl.BlockSpec((tm, E), lambda i: (i, 0)),
        ),
        compiler_params=pltpu.CompilerParams(
            dimension_semantics=("parallel",),
            vmem_limit_bytes=vmem_limit_bytes,
        ),
        cost_estimate=cost,
    )(x2, w1, b1_2d, w2, b2_2d)


def adapter_forward(x, w1, b1, w2, b2, *, tm=None, vmem_budget_bytes=None):
    """x: (B, S, E); weights stored as (in, out). Returns (B, S, E)."""
    B, S, E = x.shape
    A = w1.shape[1]
    M = B * S
    x2 = x.reshape(M, E)

    # Lane-dense adapter dim: zero-pad A to a multiple of 128.  Numerically
    # exact: padded h columns are ReLU(0 + 0) = 0 and padded w2 rows are 0.
    A_pad = _round_up(A, _LANE)
    if A_pad != A:
        pad = A_pad - A
        w1 = jnp.pad(w1, ((0, 0), (0, pad)))
        b1 = jnp.pad(b1, ((0, pad),))
        w2 = jnp.pad(w2, ((0, pad), (0, 0)))
        A = A_pad

    if vmem_budget_bytes is None:
        vmem_budget_bytes = _tpu_vmem_budget_bytes()
    if tm is None:
        tm = _choose_tm(M, E, A, x2.dtype.itemsize, w1.dtype.itemsize,
                        vmem_budget_bytes, _tpu_num_tensorcores())

    b1_2d = b1.reshape(1, A)
    b2_2d = b2.reshape(1, E)

    out2 = _adapter_pallas(x2, w1, b1_2d, w2, b2_2d, tm, vmem_budget_bytes)
    return out2.reshape(B, S, E)


def init_adapter_params(key, embed_dim, adapter_size, dtype=jnp.float32):
    """Deterministic init mirroring nn.Linear shapes.

    PyTorch fc1.weight is (adapter_size, embed_dim); we store the transpose
    (embed_dim, adapter_size) so the kernel computes x @ w1 + b1 directly.
    """
    k1, k2, k3, k4 = jax.random.split(key, 4)
    bound1 = 1.0 / (embed_dim ** 0.5)
    bound2 = 1.0 / (adapter_size ** 0.5)
    w1 = jax.random.uniform(k1, (embed_dim, adapter_size), dtype, -bound1, bound1)
    b1 = jax.random.uniform(k2, (adapter_size,), dtype, -bound1, bound1)
    w2 = jax.random.uniform(k3, (adapter_size, embed_dim), dtype, -bound2, bound2)
    b2 = jax.random.uniform(k4, (embed_dim,), dtype, -bound2, bound2)
    return w1, b1, w2, b2


def adapter_reference(x, w1, b1, w2, b2):
    h = jnp.maximum(x @ w1 + b1, 0.0)
    return h @ w2 + b2 + x


if __name__ == "__main__":
    key = jax.random.PRNGKey(0)
    kx, kp, kx2 = jax.random.split(key, 3)

    batch, seq, embed_dim, adapter_size = 2, 8, 32, 16
    x = jax.random.normal(kx, (batch, seq, embed_dim), dtype=jnp.float32)
    w1, b1, w2, b2 = init_adapter_params(kp, embed_dim, adapter_size)

    # f32 path: should match the pure-JAX reference closely.
    out = jax.block_until_ready(adapter_forward(x, w1, b1, w2, b2))
    ref = adapter_reference(x, w1, b1, w2, b2)
    assert out.shape == x.shape
    assert jnp.allclose(out, ref, atol=1e-5, rtol=1e-5), "f32 mismatch vs reference"

    # Ragged-rows path: M = 15 with tm = 8 exercises the partial last tile
    # (no jnp.pad / slice HBM round-trip).
    xr = jax.random.normal(kx2, (3, 5, embed_dim), dtype=jnp.float32)
    outr = jax.block_until_ready(adapter_forward(xr, w1, b1, w2, b2, tm=8))
    refr = adapter_reference(xr, w1, b1, w2, b2)
    assert outr.shape == xr.shape
    assert jnp.allclose(outr, refr, atol=1e-5, rtol=1e-5), "ragged mismatch vs reference"

    # bf16 path (native MXU dtype, f32 accumulation): looser tolerance.
    xb = x.astype(jnp.bfloat16)
    w1b, b1b, w2b, b2b = (p.astype(jnp.bfloat16) for p in (w1, b1, w2, b2))
    outb = jax.block_until_ready(adapter_forward(xb, w1b, b1b, w2b, b2b))
    assert outb.shape == x.shape
    assert jnp.allclose(outb.astype(jnp.float32), ref, atol=1e-1, rtol=1e-1), \
        "bf16 mismatch vs reference"

    print("KERNEL_OK")
</pallas_src>

<mosaic_0001>
module attributes {stable_mosaic.version = 11 : i64} {
  func.func @adapter_kernel(%arg0: i32, %arg1: memref<16x32xf32, #tpu.memory_space<vmem>>, %arg2: memref<32x128xf32, #tpu.memory_space<vmem>>, %arg3: memref<1x128xf32, #tpu.memory_space<vmem>>, %arg4: memref<128x32xf32, #tpu.memory_space<vmem>>, %arg5: memref<1x32xf32, #tpu.memory_space<vmem>>, %arg6: memref<16x32xf32, #tpu.memory_space<vmem>>) attributes {dimension_semantics = [#tpu.dimension_semantics<parallel>], iteration_bounds = array<i64: 1>, scalar_prefetch = 0 : i64, scratch_operands = 0 : i64, tpu.core_type = #tpu.core_type<tc>, window_params = [{transform_indices = @transform_0, window_bounds = array<i64: 16, 32>}, {pipeline_mode = #tpu.pipeline_mode<synchronous>, transform_indices = @transform_1, window_bounds = array<i64: 32, 128>}, {pipeline_mode = #tpu.pipeline_mode<synchronous>, transform_indices = @transform_2, window_bounds = array<i64: 1, 128>}, {pipeline_mode = #tpu.pipeline_mode<synchronous>, transform_indices = @transform_3, window_bounds = array<i64: 128, 32>}, {pipeline_mode = #tpu.pipeline_mode<synchronous>, transform_indices = @transform_4, window_bounds = array<i64: 1, 32>}, {transform_indices = @transform_5, window_bounds = array<i64: 16, 32>}]} {
    %c0 = arith.constant 0 : index
    %c0_0 = arith.constant 0 : index
    %0 = vector.load %arg1[%c0, %c0_0] : memref<16x32xf32, #tpu.memory_space<vmem>>, vector<16x32xf32>
    %c0_1 = arith.constant 0 : index
    %c0_2 = arith.constant 0 : index
    %1 = vector.load %arg2[%c0_1, %c0_2] : memref<32x128xf32, #tpu.memory_space<vmem>>, vector<32x128xf32>
    %cst = arith.constant dense<0.000000e+00> : vector<16x128xf32>
    %2 = tpu.matmul %0, %1, %cst {dimension_numbers = #tpu.dot_dimension_numbers<[1], [0], [0], [1], [0, 0, 1, 1], [], []>} : vector<16x32xf32>, vector<32x128xf32>, vector<16x128xf32> -> vector<16x128xf32>
    %c0_3 = arith.constant 0 : index
    %c0_4 = arith.constant 0 : index
    %3 = vector.load %arg3[%c0_3, %c0_4] : memref<1x128xf32, #tpu.memory_space<vmem>>, vector<1x128xf32>
    %4 = vector.broadcast %3 : vector<1x128xf32> to vector<16x128xf32>
    %5 = arith.addf %2, %4 : vector<16x128xf32>
    %cst_5 = arith.constant 0.000000e+00 : f32
    %6 = vector.broadcast %cst_5 : f32 to vector<16x128xf32>
    %7 = arith.maximumf %5, %6 : vector<16x128xf32>
    %c0_6 = arith.constant 0 : index
    %c0_7 = arith.constant 0 : index
    %8 = vector.load %arg4[%c0_6, %c0_7] : memref<128x32xf32, #tpu.memory_space<vmem>>, vector<128x32xf32>
    %cst_8 = arith.constant dense<0.000000e+00> : vector<16x32xf32>
    %9 = tpu.matmul %7, %8, %cst_8 {dimension_numbers = #tpu.dot_dimension_numbers<[1], [0], [0], [1], [0, 0, 1, 1], [], []>} : vector<16x128xf32>, vector<128x32xf32>, vector<16x32xf32> -> vector<16x32xf32>
    %c0_9 = arith.constant 0 : index
    %c0_10 = arith.constant 0 : index
    %10 = vector.load %arg5[%c0_9, %c0_10] : memref<1x32xf32, #tpu.memory_space<vmem>>, vector<1x32xf32>
    %11 = vector.broadcast %10 : vector<1x32xf32> to vector<16x32xf32>
    %12 = arith.addf %9, %11 : vector<16x32xf32>
    %13 = arith.addf %12, %0 : vector<16x32xf32>
    %c0_11 = arith.constant 0 : index
    %c0_12 = arith.constant 0 : index
    %14 = vector.load %arg6[%c0_11, %c0_12] : memref<16x32xf32, #tpu.memory_space<vmem>>, vector<16x32xf32>
    tpu.vector_store %arg6[%c0_11, %c0_12], %13 {strides = array<i32>} : memref<16x32xf32, #tpu.memory_space<vmem>>, vector<16x32xf32>,
    return
  }
  func.func @transform_0(%arg0: i32) -> (i32, i32) {
    %c0_i32 = arith.constant 0 : i32
    %c0_i32_0 = arith.constant 0 : i32
    return %arg0, %c0_i32 : i32, i32
  }
  func.func @transform_1(%arg0: i32) -> (i32, i32) {
    %c0_i32 = arith.constant 0 : i32
    %c0_i32_0 = arith.constant 0 : i32
    %c0_i32_1 = arith.constant 0 : i32
    return %c0_i32, %c0_i32_0 : i32, i32
  }
  func.func @transform_2(%arg0: i32) -> (i32, i32) {
    %c0_i32 = arith.constant 0 : i32
    %c0_i32_0 = arith.constant 0 : i32
    %c0_i32_1 = arith.constant 0 : i32
    return %c0_i32, %c0_i32_0 : i32, i32
  }
  func.func @transform_3(%arg0: i32) -> (i32, i32) {
    %c0_i32 = arith.constant 0 : i32
    %c0_i32_0 = arith.constant 0 : i32
    %c0_i32_1 = arith.constant 0 : i32
    return %c0_i32, %c0_i32_0 : i32, i32
  }
  func.func @transform_4(%arg0: i32) -> (i32, i32) {
    %c0_i32 = arith.constant 0 : i32
    %c0_i32_0 = arith.constant 0 : i32
    %c0_i32_1 = arith.constant 0 : i32
    return %c0_i32, %c0_i32_0 : i32, i32
  }
  func.func @transform_5(%arg0: i32) -> (i32, i32) {
    %c0_i32 = arith.constant 0 : i32
    %c0_i32_0 = arith.constant 0 : i32
    return %arg0, %c0_i32 : i32, i32
  }
}

</mosaic_0001>

<bundles_post_ra>
// kernel: tpu_custom_call.1
= control target key start
LH: loop header
LB: loop body
LE: loop exit
PB: predicated region body
PF: predicated region fallthrough
CT: control target
= control target key end

     0   :  { %vm34_vm0 = vcmask 261120   ;;  %s451_s0 = inlined_call_operand.vmem [shape: f32[16,32], index: 0, kind: input, shape index: {}]   ;;  %s452_s1 = inlined_call_operand.vmem [shape: f32[32,128], index: 1, kind: input, shape index: {}]   ;;  %s453_s2 = inlined_call_operand.vmem [shape: f32[1,128], index: 2, kind: input, shape index: {}]   ;;  %s454_s3 = inlined_call_operand.vmem [shape: f32[128,32], index: 3, kind: input, shape index: {}]   ;;  %s455_s4 = inlined_call_operand.vmem [shape: f32[1,32], index: 4, kind: input, shape index: {}]   ;;  %s456_s5 = inlined_call_operand.hbm [shape: f32[16,32], index: 5, kind: output, shape index: {}]  }
   0x1   :  { %v26_v0 = vld [vmem:[%s452_s1 + $0x18] sm:$0xff]  ;;  %v25_v1 = vld [vmem:[%s452_s1 + $0x10] sm:$0xff]  ;;  %v377_v2 = vld [vmem:[%s451_s0] sm:$0xff] }
   0x2   :  { %264 = vmatprep.subr.mxu0 %v26_v0  ;;  %v24_v3 = vld [vmem:[%s452_s1 + $0x8] sm:$0xff]  ;;  %272 = vmatprep.mubr.msk.f32.mxu0 %vm34_vm0, %v377_v2  ;;  %v133_v4 = vld [vmem:[%s454_s3 + $0x78] sm:$0xff]  ;;  %v132_v5 = vld [vmem:[%s454_s3 + $0x70] sm:$0xff] }
   0x3   :  { %265 = vmatpush3.msra.mxu0 %v26_v0  ;;  %275 = vmatprep.subr.mxu1 %v133_v4  ;;  %v23_v6 = vld [vmem:[%s452_s1] sm:$0xff]  ;;  %v131_v7 = vld [vmem:[%s454_s3 + $0x68] sm:$0xff] }
   0x4   :  { %266 = vmatprep.subr.mxu0 %v25_v1  ;;  %276 = vmatpush3.msra.mxu1 %v133_v4  ;;  %v22_v8 = vld [vmem:[%s451_s0 + $0x8] sm:$0xff]  ;;  %v130_v9 = vld [vmem:[%s454_s3 + $0x60] sm:$0xff] }
   0x5   :  { %267 = vmatpush3.msra.mxu0 %v25_v1  ;;  %277 = vmatprep.subr.mxu1 %v132_v5 }
   0x6   :  { %268 = vmatprep.subr.mxu0 %v24_v3  ;;  %278 = vmatpush3.msra.mxu1 %v132_v5 }
   0x7   :  { %269 = vmatpush3.msra.mxu0 %v24_v3 }
   0x8   :  { %10 = vsyncpa [#allocation3], 0  ;;  %270 = vmatprep.subr.mxu0 %v23_v6  ;;  %279 = vmatprep.subr.mxu1 %v131_v7  ;;  %v129_v10 = vld [vmem:[%s454_s3 + $0x58] sm:$0xff]  ;;  %v128_v11 = vld [vmem:[%s454_s3 + $0x50] sm:$0xff] }
   0x9   :  { %271 = vmatpush3.msra.mxu0 %v23_v6  ;;  %280 = vmatpush3.msra.mxu1 %v131_v7  ;;  %v127_v12 = vld [vmem:[%s454_s3 + $0x48] sm:$0xff]  ;;  %v126_v13 = vld [vmem:[%s454_s3 + $0x40] sm:$0xff]  ;;  %v125_v14 = vld [vmem:[%s454_s3 + $0x38] sm:$0xff] }
   0xa   :  { %273 = vmatmul.mubr.msk.f32.vlgmr.msra.gmra.mxu0 %vm34_vm0, %v22_v8  ;;  %281 = vmatprep.subr.mxu1 %v130_v9  ;;  %v124_v15 = vld [vmem:[%s454_s3 + $0x30] sm:$0xff]  ;;  %v123_v16 = vld [vmem:[%s454_s3 + $0x28] sm:$0xff]  ;;  %v122_v17 = vld [vmem:[%s454_s3 + $0x20] sm:$0xff] }
   0xb   :  { %282 = vmatpush3.msra.mxu1 %v130_v9  ;;  %v121_v18 = vld [vmem:[%s454_s3 + $0x18] sm:$0xff]  ;;  %v120_v19 = vld [vmem:[%s454_s3 + $0x10] sm:$0xff]  ;;  %v119_v20 = vld [vmem:[%s454_s3 + $0x8] sm:$0xff] }
   0xc   :  { %283 = vmatprep.subr.mxu1 %v129_v10  ;;  %v118_v21 = vld [vmem:[%s454_s3] sm:$0xff]  ;;  %s335_s3 = smov [#allocation2]  }
   0xd   :  { %284 = vmatpush3.msra.mxu1 %v129_v10  ;;  %v236_v22 = vld [vmem:[%s453_s2] ss:$0 sm:$0xff]  ;;  %s225_s13 = sshll.u32 %s335_s3, 4  ;;  %s226_s13 = int_to_ptr.vmem [resolvable:$true] %s225_s13 }
   0xe   :  { %285 = vmatprep.subr.mxu1 %v128_v11  ;;  %v239_v29 = vld [vmem:[%s455_s4] ss:$0 sm:$0xff]  ;;  %s313_s2 = scalar_lea.vmem %s226_s13, 256  ;;  %p318_p1 = scmp.lt.s32.totalorder %s226_s13, %s226_s13 }
   0xf   :  { %286 = vmatpush3.msra.mxu1 %v128_v11  ;;  %p314_p0 = scmp.ne.s32.totalorder %s226_s13, %s313_s2  ;;  %p319_p2 = scmp.lt.s32.totalorder %s313_s2, %s313_s2 }
  0x10   :  { %287 = vmatprep.subr.mxu1 %v127_v12 }
  0x11   :  { %288 = vmatpush3.msra.mxu1 %v127_v12  ;;  %p320_p3 = por %p319_p2, %p318_p1 }
  0x12   :  { %289 = vmatprep.subr.mxu1 %v126_v13 }
  0x13   :  { %290 = vmatpush3.msra.mxu1 %v126_v13  ;;  %p321_p4 = pnand %p320_p3, %p314_p0 }
  0x14   :  { %291 = vmatprep.subr.mxu1 %v125_v14 }
  0x15   :  { %292 = vmatpush3.msra.mxu1 %v125_v14 }
  0x16   :  { %293 = vmatprep.subr.mxu1 %v124_v15 }
  0x17   :  { %294 = vmatpush3.msra.mxu1 %v124_v15 }
  0x18   :  { %295 = vmatprep.subr.mxu1 %v123_v16 }
  0x19   :  { %296 = vmatpush3.msra.mxu1 %v123_v16 }
  0x1a   :  { %297 = vmatprep.subr.mxu1 %v122_v17 }
  0x1b   :  { %298 = vmatpush3.msra.mxu1 %v122_v17 }
  0x1c   :  { %299 = vmatprep.subr.mxu1 %v121_v18 }
  0x1d   :  { %300 = vmatpush3.msra.mxu1 %v121_v18 }
  0x1e   :  { %301 = vmatprep.subr.mxu1 %v120_v19 }
  0x1f   :  { %302 = vmatpush3.msra.mxu1 %v120_v19 }
  0x20   :  { %303 = vmatprep.subr.mxu1 %v119_v20 }
  0x21   :  { %304 = vmatpush3.msra.mxu1 %v119_v20 }
  0x22   :  { %305 = vmatprep.subr.mxu1 %v118_v21 }
  0x23   :  { %306 = vmatpush3.msra.mxu1 %v118_v21 }
  0xca   :  { %v274_v23 = vpop.f32.mrf.mxu0 }
  0xcb   :  { %v113_v24 = vadd.f32 %v274_v23, %v236_v22 }
  0xcc   :  { %v107_v25 = vpop.f32.mrf.mxu0 }
  0xcd   :  { %v108_v26 = vadd.f32 %v236_v22, %v107_v25  ;;  %v117_v28 = vmax.f32 %v113_v24, 0.0 }
  0xcf   :  { %v116_v27 = vmax.f32 %v108_v26, 0.0 }
  0xd1   :  { %307 = vmatprep.mubr.f32.mxu1 %v116_v27 }
  0xd2   :  { %308 = vmatmul.mubr.f32.vlgmr.msra.gmra.mxu1 %v117_v28 }
 0x192   :  { %v309_v30 = vpop.f32.mrf.mxu1 }
 0x193   :  { %v213_v31 = vadd.f32 %v309_v30, %v239_v29 }
 0x194   :  { %v207_v32 = vpop.f32.mrf.mxu1 }
 0x195   :  { %v217_v33 = vadd.f32 %v213_v31, %v22_v8  ;;  %v208_v34 = vadd.f32 %v239_v29, %v207_v32 }
 0x197   :  { %219 = vst.msk [vmem:[#allocation2 + $0x8] sm:$0xff] %vm34_vm0, %v217_v33  ;;  %v216_v35 = vadd.f32 %v208_v34, %v377_v2 }
 0x199   :  { %218 = vst.msk [vmem:[#allocation2] sm:$0xff] %vm34_vm0, %v216_v35 }
 0x19a   :  { %324 = shalt.err (!%p321_p4)
}
 0x19b   :  { %s336_s4 = smov 128   ;;  %s337_s14 = smov 8  }
 0x19c   :  { %231 = dma.vmem_to_hbm [thread:$0]  %s226_s13, 256, %s456_s5, [#allocation3], %s336_s4, %s336_s4, %s337_s14  }
 0x19d   :  { %333 = dma.done.wait [#allocation3], 256  }
 0x19e   :  { %334 = vsyncadd [#allocation3], 4294967040 }
 0x19f   :  { %235 = vsyncpa [#allocation3], 1 }

</bundles_post_ra>
